<compile_context>
chip_gen: v7x
topology: tpu7x:2x2x1
jax: 0.10.0
libtpu: 0.0.40
codegen_flags: <defaults>
</compile_context>

<pallas_src>
import jax
import jax.numpy as jnp
from jax.experimental import pallas as pl
from jax.experimental.pallas import tpu as pltpu

LANE = 128
SUBLANE = 8
MAX_TILE_R = 2048   # 2048 x 128 f32 block = 1 MiB; double-buffered input ~2 MiB
NUM_SPLITS = 2      # leading "parallel" axis -> shards across the 2 TCs on v7x


def _round_up(x, m):
    return ((x + m - 1) // m) * m


def _reg_loss_kernel(x_ref, acc_ref):
    i = pl.program_id(1)

    @pl.when(i == 0)
    def _init():
        acc_ref[...] = jnp.zeros_like(acc_ref)

    xf = x_ref[...].astype(jnp.float32)
    # Elementwise square + accumulate on the VPU. The reshape is layout-clean
    # (tile_r is a multiple of 8) and the axis-0 sum is just vreg adds; the
    # accumulator stays resident in VMEM across the inner ("arbitrary") axis.
    acc_ref[...] += jnp.sum((xf * xf).reshape(-1, SUBLANE, LANE), axis=0)


def renderer_forward_loss(x, use_reg=True):
    """Mirrors Renderer.forward_loss: returns (forward(x), loss)."""
    # TODO(synk): Renderer.forward raises NotImplementedError upstream; the
    # concrete volume-rendering forward belongs to subclasses and is not faked.
    # Base-class forward_loss just threads the subclass output through, so the
    # passthrough is an identity done in the wrapper (no HBM copy in-kernel).
    y = x

    if not use_reg:
        # reg is None -> torch.tensor(0.0, dtype=x.dtype)
        return y, jnp.zeros((), dtype=x.dtype)

    n = x.size
    rows = pl.cdiv(n, LANE)
    rows_per_split = pl.cdiv(rows, NUM_SPLITS)
    # Multiple of 32 rows: layout-clean for f32 / bf16(16,128) / int8(32,128).
    tile_r = min(MAX_TILE_R, _round_up(rows_per_split, 32))
    blocks_per_split = pl.cdiv(rows_per_split, tile_r)
    padded_rows = NUM_SPLITS * blocks_per_split * tile_r
    padded_n = padded_rows * LANE

    xf = x.reshape(-1)
    if padded_n != n:
        # Zero padding contributes nothing to the sum of squares.
        xf = jnp.pad(xf, (0, padded_n - n))
    x2 = xf.reshape(padded_rows, LANE)

    partials = pl.pallas_call(
        _reg_loss_kernel,
        out_shape=jax.ShapeDtypeStruct((NUM_SPLITS * SUBLANE, LANE), jnp.float32),
        grid_spec=pltpu.PrefetchScalarGridSpec(
            num_scalar_prefetch=0,
            grid=(NUM_SPLITS, blocks_per_split),
            in_specs=[pl.BlockSpec(
                (tile_r, LANE),
                lambda c, i: (c * blocks_per_split + i, 0))],
            # Per-split (8,128) accumulator block; same block across the inner
            # reduction axis, distinct block per parallel split.
            out_specs=pl.BlockSpec((SUBLANE, LANE), lambda c, i: (c, 0)),
        ),
        compiler_params=pltpu.CompilerParams(
            dimension_semantics=("parallel", "arbitrary")),
    )(x2)

    # Final tiny cross-lane / cross-split reduce + mean normalization in XLA.
    loss = (jnp.sum(partials) / jnp.float32(n)).astype(x.dtype)
    return y, loss


if __name__ == "__main__":
    key = jax.random.PRNGKey(0)
    x = jax.random.normal(key, (2, 4, 16, 16), dtype=jnp.float32)

    # Case 1: reg provided (L2 mean-of-squares stand-in).
    y, loss = renderer_forward_loss(x, use_reg=True)
    y, loss = jax.block_until_ready((y, loss))

    # Case 2: reg is None -> zero loss, same dtype as x.
    y0, loss0 = renderer_forward_loss(x, use_reg=False)
    y0, loss0 = jax.block_until_ready((y0, loss0))

    # Reference checks (plain JAX).
    ref_loss = jnp.mean(x.astype(jnp.float32) ** 2)
    assert y.shape == x.shape and y.dtype == x.dtype
    assert jnp.allclose(y, x)
    assert jnp.allclose(loss, ref_loss, rtol=1e-5, atol=1e-5)
    assert loss0.shape == () and loss0.dtype == x.dtype and float(loss0) == 0.0

    # Also exercise a non-multiple-of-128 / larger shape to check padding path.
    x_big = jax.random.normal(jax.random.PRNGKey(1), (3, 5, 17, 9), dtype=jnp.float32)
    y_big, loss_big = jax.block_until_ready(renderer_forward_loss(x_big, use_reg=True))
    ref_big = jnp.mean(x_big.astype(jnp.float32) ** 2)
    assert jnp.allclose(loss_big, ref_big, rtol=1e-5, atol=1e-5)

    print("KERNEL_OK")
</pallas_src>

<mosaic_0001>
module attributes {stable_mosaic.version = 11 : i64} {
  func.func @_reg_loss_kernel(%arg0: i32, %arg1: i32, %arg2: memref<32x128xf32, #tpu.memory_space<vmem>>, %arg3: memref<8x128xf32, #tpu.memory_space<vmem>>) attributes {dimension_semantics = [#tpu.dimension_semantics<parallel>, #tpu.dimension_semantics<arbitrary>], iteration_bounds = array<i64: 2, 1>, scalar_prefetch = 0 : i64, scratch_operands = 0 : i64, tpu.core_type = #tpu.core_type<tc>, window_params = [{transform_indices = @transform_0, window_bounds = array<i64: 32, 128>}, {transform_indices = @transform_1, window_bounds = array<i64: 8, 128>}]} {
    %c0_i32 = arith.constant 0 : i32
    %0 = arith.cmpi eq, %arg1, %c0_i32 : i32
    %1 = arith.extui %0 : i1 to i32
    %c0_i32_0 = arith.constant 0 : i32
    %2 = arith.cmpi ne, %1, %c0_i32_0 : i32
    scf.if %2 {
      %cst_6 = arith.constant 0.000000e+00 : f32
      %10 = vector.broadcast %cst_6 : f32 to vector<8x128xf32>
      %c0_7 = arith.constant 0 : index
      %c0_8 = arith.constant 0 : index
      %11 = vector.load %arg3[%c0_7, %c0_8] : memref<8x128xf32, #tpu.memory_space<vmem>>, vector<8x128xf32>
      tpu.vector_store %arg3[%c0_7, %c0_8], %10 {strides = array<i32>} : memref<8x128xf32, #tpu.memory_space<vmem>>, vector<8x128xf32>,
    } else {
    }
    %c0 = arith.constant 0 : index
    %c0_1 = arith.constant 0 : index
    %3 = vector.load %arg2[%c0, %c0_1] : memref<32x128xf32, #tpu.memory_space<vmem>>, vector<32x128xf32>
    %c0_2 = arith.constant 0 : index
    %c0_3 = arith.constant 0 : index
    %4 = vector.load %arg3[%c0_2, %c0_3] : memref<8x128xf32, #tpu.memory_space<vmem>>, vector<8x128xf32>
    %5 = arith.mulf %3, %3 : vector<32x128xf32>
    %6 = vector.shape_cast %5 : vector<32x128xf32> to vector<4x8x128xf32>
    %cst = arith.constant dense<0.000000e+00> : vector<8x128xf32>
    %7 = vector.multi_reduction <add>, %6, %cst [0] : vector<4x8x128xf32> to vector<8x128xf32>
    %8 = arith.addf %4, %7 : vector<8x128xf32>
    %c0_4 = arith.constant 0 : index
    %c0_5 = arith.constant 0 : index
    %9 = vector.load %arg3[%c0_4, %c0_5] : memref<8x128xf32, #tpu.memory_space<vmem>>, vector<8x128xf32>
    tpu.vector_store %arg3[%c0_4, %c0_5], %8 {strides = array<i32>} : memref<8x128xf32, #tpu.memory_space<vmem>>, vector<8x128xf32>,
    return
  }
  func.func @transform_0(%arg0: i32, %arg1: i32) -> (i32, i32) {
    %c1_i32 = arith.constant 1 : i32
    %0 = arith.muli %arg0, %c1_i32 : i32
    %1 = arith.addi %0, %arg1 : i32
    %c0_i32 = arith.constant 0 : i32
    %c0_i32_0 = arith.constant 0 : i32
    return %1, %c0_i32 : i32, i32
  }
  func.func @transform_1(%arg0: i32, %arg1: i32) -> (i32, i32) {
    %c0_i32 = arith.constant 0 : i32
    %c0_i32_0 = arith.constant 0 : i32
    return %arg0, %c0_i32 : i32, i32
  }
}

</mosaic_0001>

<bundles_post_ra>
// kernel: tpu_custom_call.1
= control target key start
LH: loop header
LB: loop body
LE: loop exit
PB: predicated region body
PF: predicated region fallthrough
CT: control target
= control target key end

     0   :  { %6 = vsyncpa [#allocation3], 0  ;;  %s646_s0 = inlined_call_operand.hbm [shape: f32[64,128], index: 0, kind: input, shape index: {}]   ;;  %s647_s1 = inlined_call_operand.hbm [shape: f32[16,128], index: 1, kind: output, shape index: {}]  }
   0x1   :  { %8 = vsyncpa [#allocation3 + $0x1], 0 }
   0x2   :  { %9 = vsyncpa [#allocation4], 0 }
   0x3   :  { %11 = vsyncpa [#allocation4 + $0x1], 0  ;;  %s472_s6 = smov 0   ;;  %s474_s7 = smov 0  }
   0x4   :  { %s476_s8 = smov 0   ;;  %s478_s9 = smov 0  }
   0x5   :  { %s480_s10 = smov 0   ;;  %s482_s11 = smov 0  }
   0x6 LB: > { %s264_s12 = sadd.s32 4294967295, %s456_s11   ;;  %s265_s13 = sadd.s32 4294967294, %s456_s11   ;;  %s456_s11 = sphi %s482_s11, %s17_s11   ;;  %s452_s10 = sphi %s480_s10, %s662_s10   ;;  %s448_s9 = sphi %s478_s9, %s661_s9   ;;  %s444_s8 = sphi %s476_s8, %s660_s8   ;;  %s440_s7 = sphi %s474_s7, %s659_s7   ;;  %s436_s6 = sphi %s472_s6, %s658_s6  }
   0x7   : > { %s29_s14 = sadd.s32 1, %s452_s10  ;;  %s38_s15 = sadd.s32 1, %s444_s8 }
   0x8   : > { %p31_p0 = scmp.ge.s32.totalorder %s29_s14, 2  ;;  %p45_p1 = scmp.ne.s32.totalorder %s444_s8, %s440_s7 }
   0x9   : > { %p46_p2 = scmp.eq.s32.totalorder %s456_s11, 0  ;;  %p51_p3 = scmp.ne.s32.totalorder %s440_s7, %s436_s6 }
   0xa   : > { %s664_s14 = smov (%p31_p0, %s29_s14), 0  ;;  %p52_p5 = scmp.eq.s32.totalorder %s264_s12, 0 }
   0xb   : > { %p513_p4 = por %p46_p2, %p45_p1  ;;  %s35_s17 = ssub.s32 %s452_s10, %s664_s14 }
   0xc   : > { %p75_p6 = scmp.eq.s32.totalorder %s264_s12, 1  ;;  %p36_p7 = scmp.eq.s32.totalorder %s35_s17, 0 }
   0xd   : > { %p519_p8 = por %p52_p5, %p51_p3  ;;  %p81_p10 = scmp.eq.s32.totalorder %s265_s13, 1 }
   0xe   : > { %p523_p9 = por %p75_p6, %p45_p1  ;;  %p291_p13 = scmp.lt.s32.totalorder %s456_s11, 2 }
   0xf   : > { %s528_s20 = scalar_select %p36_p7, %s444_s8, %s38_s15  }
  0x10   : > { %s651_s19 = scalar_select %p523_p9, 1, 0 }
  0x11   : > { %p530_p11 = por %p81_p10, %p51_p3  ;;  %s101_s22 = sand.u32 1, %s444_s8  }
  0x12   : > { %s268_s23 = sshll.u32 %s101_s22, 5  ;;  %s278_s24 = sshll.u32 %s452_s10, 9 }
  0x13   : > { %s652_s21 = scalar_select %p530_p11, 1, 0 }
  0x14   : > { %s541_s27 = scalar_lea.hbm %s646_s0, %s278_s24  ;;  %s105_s28 = scalar_lea.vmem [#allocation2], %s268_s23 }
  0x15   : > { %s113_s29 = sshll.u32 %s105_s28, 4  ;;  %p547_p0 = pnand %p291_p13, %p513_p4  ;;  %s543_s29 = int_to_ptr.vmem [resolvable:$true] %s113_s29 }
  0x16   : > { %s552_s2 = scalar_lea.sflag [#allocation3], %s101_s22  ;;  %s344_s3 = scalar_lea.hbm %s541_s27, 512 }
  0x17   : > { %p345_p2 = scmp.ne.s32.totalorder %s541_s27, %s344_s3  ;;  %p346_p3 = pneg %p547_p0 }
  0x18   : > { %s349_s12 = scalar_lea.hbm %s646_s0, 1024  ;;  %p350_p4 = scmp.lt.u32.totalorder %s541_s27, %s646_s0 }
  0x19   : > { %p347_p5 = pnand %p346_p3, %p345_p2  ;;  %p351_p7 = scmp.lt.u32.totalorder %s349_s12, %s344_s3 }
  0x1a   : > { %p353_p13 = scmp.lt.u32.totalorder %s344_s3, %s541_s27 }
  0x1b   : > { %p348_p6 = pneg %p347_p5  ;;  %p352_p10 = por %p351_p7, %p350_p4 }
  0x1d   : > { %p354_p12 = por %p353_p13, %p352_p10 }
  0x1f   : > { %p355_p1 = pnand %p354_p12, %p348_p6 }
  0x21   : > { %358 = shalt.err (!%p355_p1)
}
  0x22   : > { %s359_s16 = scalar_lea.vmem %s543_s29, 512  ;;  %s458_s17 = smov [#allocation2]  }
  0x23   : > { %p360_p2 = scmp.ne.s32.totalorder %s543_s29, %s359_s16  ;;  %s364_s22 = sshll.u32 %s458_s17, 4  ;;  %s365_s22 = int_to_ptr.vmem [resolvable:$false] %s364_s22 }
  0x24   : > { %s366_s23 = scalar_lea.vmem %s365_s22, 1024  ;;  %p367_p9 = scmp.lt.s32.totalorder %s543_s29, %s365_s22 }
  0x25   : > { %p362_p5 = pnand %p360_p2, %p346_p3  ;;  %p368_p4 = scmp.lt.s32.totalorder %s366_s23, %s359_s16 }
  0x27   : > { %p363_p11 = pneg %p362_p5  ;;  %p369_p7 = por %p368_p4, %p367_p9 }
  0x29   : > { %p370_p10 = pnand %p369_p7, %p363_p11 }
  0x2b   : > { %373 = shalt.err (!%p370_p10)
}
  0x2c   : > { %s459_s24 = smov 128   ;;  %s460_s25 = smov 8  }
  0x2d   : > { %286 = dma.hbm_to_vmem [thread:$0]  (!%p547_p0), %s541_s27, 512, %s543_s29, %s552_s2, %s459_s24, %s459_s24, %s460_s25  }
  0x2e   : > { %p121_p12 = scmp.lt.s32.totalorder %s456_s11, 3  ;;  %p654_p1 = scmp.ge.s32.totalorder %s456_s11, 1 }
  0x30   : > { %p122_p3 = pnand %p654_p1, %p121_p12 }
  0x31   : > { %s584_s26 = sand.u32 (!%p122_p3), 1, %s440_s7  }
  0x32   : > { %125 = sbr.rel (%p122_p3) target bundleno = 84 (0x54), region = 24  ;;  %s272_s28 = sshll.u32 (!%p122_p3), %s584_s26, 5 }
  0x33   : > { %s128_s3 = scalar_lea.sflag (!%p122_p3), [#allocation3], %s584_s26  ;;  %s131_s4 = scalar_lea.vmem (!%p122_p3), [#allocation2], %s272_s28 }
  0x39   : > { %427 = dma.done.wait (%p519_p8), %s128_s3, 512  }
  0x3a   : > { %429 = vsyncadd (%p519_p8), %s128_s3, 4294966784  ;;  %s273_s27 = sshll.u32 %s584_s26, 3  ;;  %v157_v0 = vld [vmem:[%s131_s4] sm:$0xff]  ;;  %v158_v1 = vld [vmem:[%s131_s4 + $0x8] sm:$0xff]  ;;  %s275_s29 = sshll.u32 %s448_s9, 7 }
  0x3b   : > { %v159_v2 = vld [vmem:[%s131_s4 + $0x10] sm:$0xff]  ;;  %v160_v3 = vld [vmem:[%s131_s4 + $0x18] sm:$0xff]  ;;  %v162_v4 = vmul.f32 %v157_v0, %v157_v0  ;;  %v163_v5 = vmul.f32 %v158_v1, %v158_v1  ;;  %s149_s30 = scalar_lea.vmem [#allocation5], %s273_s27  ;;  %s597_s12 = scalar_lea.hbm %s647_s1, %s275_s29 }
  0x3c   : > { %v164_v6 = vmul.f32 %v159_v2, %v159_v2  ;;  %v165_v7 = vmul.f32 %v160_v3, %v160_v3  ;;  %s185_s2 = sshll.u32 %s149_s30, 4  ;;  %s172_s13 = scalar_lea.sflag [#allocation4], %s584_s26  ;;  %s599_s2 = int_to_ptr.vmem [resolvable:$true] %s185_s2 }
  0x3d   : > { %v166_v8 = vadd.f32 %v163_v5, %v162_v4  ;;  %s374_s15 = scalar_lea.vmem %s599_s2, 128  ;;  %p655_p9 = scmp.ne.s32.totalorder %s651_s19, 0 }
  0x3e   : > { %p375_p8 = scmp.ne.s32.totalorder %s599_s2, %s374_s15  ;;  %s461_s9 = smov [#allocation5]  }
  0x3f   : > { %v167_v9 = vadd.f32 %v166_v8, %v164_v6  ;;  %s378_s16 = sshll.u32 %s461_s9, 4  ;;  %s379_s16 = int_to_ptr.vmem [resolvable:$false] %s378_s16 }
  0x40   : > { %p376_p11 = pnand %p375_p8, %p655_p9  ;;  %s380_s17 = scalar_lea.vmem %s379_s16, 256 }
  0x41   : > { %v168_v10 = vadd.f32 %v167_v9, %v165_v7  ;;  %p381_p6 = scmp.lt.s32.totalorder %s599_s2, %s379_s16  ;;  %p382_p13 = scmp.lt.s32.totalorder %s380_s17, %s374_s15 }
  0x42   : > { %p377_p0 = pneg %p376_p11 }
  0x43   : > { %170 = vst [vmem:[%s149_s30] sm:$0xff] %v168_v10  ;;  %p383_p2 = por %p382_p13, %p381_p6 }
  0x45   : > { %p384_p5 = pnand %p383_p2, %p377_p0 }
  0x47   : > { %387 = shalt.err (!%p384_p5)
}
  0x48   : > { %s388_s22 = scalar_lea.hbm %s597_s12, 128  ;;  %s392_s25 = scalar_lea.hbm %s647_s1, 256 }
  0x49   : > { %p389_p4 = scmp.ne.s32.totalorder %s597_s12, %s388_s22  ;;  %p393_p12 = scmp.lt.u32.totalorder %s597_s12, %s647_s1 }
  0x4a   : > { %p394_p1 = scmp.lt.u32.totalorder %s392_s25, %s388_s22  ;;  %p396_p8 = scmp.lt.u32.totalorder %s388_s22, %s597_s12 }
  0x4b   : > { %p390_p7 = pnand %p389_p4, %p655_p9 }
  0x4c   : > { %p395_p3 = por %p394_p1, %p393_p12 }
  0x4d   : > { %p391_p10 = pneg %p390_p7 }
  0x4e   : > { %p397_p11 = por %p396_p8, %p395_p3 }
  0x50   : > { %p398_p0 = pnand %p397_p11, %p391_p10 }
  0x52   : > { %401 = shalt.err (!%p398_p0)
}
  0x53   : > { %281 = dma.vmem_to_hbm [thread:$0]  (%p655_p9), %s599_s2, 128, %s597_s12, %s172_s13  }
  0x54 PF: > { %s197_s3 = sand.u32 1, %s436_s6   ;;  %p656_p6 = scmp.ne.s32.totalorder %s652_s21, 0 }
  0x55   : > { %p657_p13 = scmp.ge.s32.totalorder %s456_s11, 2  ;;  %s198_s4 = scalar_lea.sflag [#allocation4], %s197_s3 }
  0x57   : > { %p288_p2 = pnand %p657_p13, %p656_p6 }
  0x59   : > { %431 = dma.done.wait (!%p288_p2), %s198_s4, 128  }
  0x5a   : > { %433 = vsyncadd (!%p288_p2), %s198_s4, 4294967168  ;;  %s17_s11 = sadd.s32 1, %s456_s11   ;;  %s658_s6 = smov %s440_s7 }
  0x5b   : > { %p14_p5 = scmp.ge.s32.totalorder %s17_s11, 4   ;;  %s659_s7 = smov %s444_s8 }
  0x5c   : > { %s660_s8 = smov %s528_s20  ;;  %s661_s9 = smov %s452_s10 }
  0x5d   : > { %s662_s10 = smov %s664_s14  ;;  %16 = sbr.rel (!%p14_p5) target bundleno = 6 (0x6), region = 73 }
  0x64   :  { %203 = vsyncpa [#allocation3], 1 }
  0x65   :  { %205 = vsyncpa [#allocation3 + $0x1], 1 }
  0x66   :  { %206 = vsyncpa [#allocation4], 1 }
  0x67   :  { %208 = vsyncpa [#allocation4 + $0x1], 1 }

</bundles_post_ra>
